<compile_context>
chip_gen: v7x
topology: tpu7x:2x2x1
jax: 0.10.0
libtpu: 0.0.40
codegen_flags: <defaults>
</compile_context>

<pallas_src>
import functools

import jax
import jax.numpy as jnp
from jax.experimental import pallas as pl
from jax.experimental.pallas import tpu as pltpu


# ---------------------------------------------------------------------------
# kernels
# ---------------------------------------------------------------------------
def _proj_kernel(x_ref, w1_ref, dinv_ref, xw_ref):
    """xw = dinv_row * (x @ w1)  (bf16 in, f32 MXU accumulate, bf16 out).

    The dinv pre-scale is the A-column normalization folded into XW for pass 1.
    """
    xw = jnp.dot(x_ref[...], w1_ref[...], preferred_element_type=jnp.float32)
    xw_ref[...] = (dinv_ref[...] * xw).astype(xw_ref.dtype)


def _agg1_kernel(a_ref, xw_ref, w2_ref, b1_ref, dinv_ref, hw_ref, acc_ref,
                 *, tk, resident):
    """Pass 1: accumulate C @ XW over k; epilogue = dinv*(relu(dinv*. + b1) @ W2)."""
    k = pl.program_id(1)

    @pl.when(k == 0)
    def _():
        acc_ref[...] = jnp.zeros_like(acc_ref)

    # 8-bit (or bf16) count tile -> bf16 for the MXU (cheap VPU work under DMA).
    a = a_ref[...].astype(jnp.float32).astype(jnp.bfloat16)
    if resident:
        off = pl.multiple_of(k * tk, tk)
        xw = xw_ref[pl.ds(off, tk), :]
    else:
        xw = xw_ref[...]
    acc_ref[...] += jnp.dot(a, xw, preferred_element_type=jnp.float32)

    @pl.when(k == pl.num_programs(1) - 1)
    def _():
        # row-scale + bias + ReLU epilogue in f32 (only once, on finalize)
        h = jnp.maximum(dinv_ref[...] * acc_ref[...] + b1_ref[...], 0.0)
        # TODO(synk): F.dropout is identity in eval mode; training-mode dropout
        # (and FastGCN's layer-wise importance sampling) are not implemented.
        hw = jnp.dot(h.astype(jnp.bfloat16), w2_ref[...],
                     preferred_element_type=jnp.float32)
        # pre-apply the pass-2 column normalization (dinv) before storing
        hw_ref[...] = (dinv_ref[...] * hw).astype(hw_ref.dtype)


def _agg2_kernel(a_ref, hw_ref, b2_ref, dinv_ref, o_ref, *, tk, resident):
    """Pass 2: accumulate C @ HW directly in the f32 output block; epilogue = dinv*. + b2."""
    k = pl.program_id(1)

    @pl.when(k == 0)
    def _():
        o_ref[...] = jnp.zeros_like(o_ref)

    a = a_ref[...].astype(jnp.float32).astype(jnp.bfloat16)
    if resident:
        off = pl.multiple_of(k * tk, tk)
        hw = hw_ref[pl.ds(off, tk), :]
    else:
        hw = hw_ref[...]
    o_ref[...] += jnp.dot(a, hw, preferred_element_type=jnp.float32)

    @pl.when(k == pl.num_programs(1) - 1)
    def _():
        o_ref[...] = dinv_ref[...] * o_ref[...] + b2_ref[...]


# ---------------------------------------------------------------------------
# tiling / padding helpers
# ---------------------------------------------------------------------------
def _round_up(x, m):
    return ((x + m - 1) // m) * m


def _pad_nodes(n):
    """Tile-driven node padding: multiples of 128 for small graphs, 512 otherwise."""
    n128 = _round_up(max(n, 128), 128)
    return n128 if n128 <= 512 else _round_up(n128, 512)


def _tiles_for(n_pad):
    """(tm, tk) for the aggregation passes; n_pad is guaranteed divisible."""
    if n_pad <= 512:
        return n_pad, n_pad
    tm = 512
    tk = 512
    for cand in (2048, 1024):
        if n_pad % cand == 0:
            tk = cand
            break
    return tm, tk


_VMEM_LIMIT = 48 * 1024 * 1024     # scoped limit: > v5e/v6e defaults, < v7x 64 MiB
_RESIDENT_BUDGET = 40 * 1024 * 1024


def _use_resident(n_pad, tm, tk, ch, co, a_bytes):
    """Can XW / HW stay fully VMEM-resident (assuming worst-case double buffers)?"""
    a_blk = tm * tk * a_bytes * 2
    res = n_pad * max(ch, co) * 2 * 2          # bf16 resident operand
    w2 = ch * co * 2 * 2
    outs = tm * max(ch, co) * 4 * 2
    acc = tm * ch * 4
    return a_blk + res + w2 + outs + acc < _RESIDENT_BUDGET


# ---------------------------------------------------------------------------
# graph preparation (hoisted out of the forward pass; run once per graph)
# ---------------------------------------------------------------------------
def prepare_graph(edge_index, num_nodes, edge_weight=None):
    """Build padded (self-looped) count/weight matrix C and D^-1/2 vector.

    A_hat = diag(dinv) @ C @ diag(dinv).  For unit edge weights C holds small
    integer counts and is stored exactly in int8; otherwise bf16.
    """
    n_pad = _pad_nodes(num_nodes)
    src, dst = edge_index[0], edge_index[1]
    num_edges = edge_index.shape[1]
    if edge_weight is None:
        w = jnp.ones((num_edges,), jnp.float32)
    else:
        w = edge_weight.astype(jnp.float32)
    loop = jnp.arange(num_nodes, dtype=edge_index.dtype)
    src_a = jnp.concatenate([src, loop])
    dst_a = jnp.concatenate([dst, loop])
    w_a = jnp.concatenate([w, jnp.ones((num_nodes,), jnp.float32)])

    c = jnp.zeros((num_nodes, num_nodes), jnp.float32).at[dst_a, src_a].add(w_a)
    deg = c.sum(axis=1)
    dinv = jnp.where(deg > 0.0, 1.0 / jnp.sqrt(deg), 0.0)

    dinv_p = jnp.zeros((n_pad, 1), jnp.float32).at[:num_nodes, 0].set(dinv)
    c_pad = jnp.zeros((n_pad, n_pad), jnp.float32).at[:num_nodes, :num_nodes].set(c)
    if edge_weight is None and float(c.max()) <= 127.0:
        c_store = c_pad.astype(jnp.int8)       # exact, halves HBM traffic on A
    else:
        c_store = c_pad.astype(jnp.bfloat16)
    return c_store, dinv_p


def gcn_norm_dense(edge_index, edge_weight, num_nodes):
    """f32 dense normalized adjacency (reference only)."""
    src, dst = edge_index[0], edge_index[1]
    num_edges = edge_index.shape[1]
    if edge_weight is None:
        edge_weight = jnp.ones((num_edges,), jnp.float32)
    loop = jnp.arange(num_nodes, dtype=edge_index.dtype)
    src = jnp.concatenate([src, loop])
    dst = jnp.concatenate([dst, loop])
    w = jnp.concatenate([edge_weight, jnp.ones((num_nodes,), jnp.float32)])
    adj = jnp.zeros((num_nodes, num_nodes), jnp.float32).at[dst, src].add(w)
    deg = adj.sum(axis=1)
    dinv = jnp.where(deg > 0.0, 1.0 / jnp.sqrt(deg), 0.0)
    return dinv[:, None] * adj * dinv[None, :]


def init_params(key, in_c, hid_c, out_c):
    """Glorot-uniform weights + zero biases (as in GCNConv.reset_parameters)."""
    k1, k2 = jax.random.split(key)

    def glorot(k, fan_in, fan_out):
        lim = jnp.sqrt(6.0 / (fan_in + fan_out))
        return jax.random.uniform(k, (fan_in, fan_out), jnp.float32, -lim, lim)

    w1 = glorot(k1, in_c, hid_c)
    b1 = jnp.zeros((1, hid_c), jnp.float32)
    w2 = glorot(k2, hid_c, out_c)
    b2 = jnp.zeros((1, out_c), jnp.float32)
    return w1, b1, w2, b2


# ---------------------------------------------------------------------------
# forward pass
# ---------------------------------------------------------------------------
def fastgcn_forward(x, params, a_counts, dinv):
    """x: [n, c_in] f32; a_counts: [n_pad, n_pad] int8/bf16; dinv: [n_pad, 1] f32."""
    w1, b1, w2, b2 = params
    n, c_in = x.shape
    c_hid = w1.shape[1]
    c_out = w2.shape[1]
    n_pad = a_counts.shape[0]
    a_bytes = a_counts.dtype.itemsize

    tm, tk = _tiles_for(n_pad)
    ci = _round_up(c_in, 128)
    ch = _round_up(c_hid, 128)
    co = _round_up(c_out, 128)
    resident = _use_resident(n_pad, tm, tk, ch, co, a_bytes)

    # lane-dense padded operands (bf16 for MXU inputs, f32 for biases/scales)
    x_p = (jnp.zeros((n_pad, ci), jnp.float32).at[:n, :c_in].set(x)).astype(jnp.bfloat16)
    w1_p = (jnp.zeros((ci, ch), jnp.float32).at[:c_in, :c_hid].set(w1)).astype(jnp.bfloat16)
    b1_p = jnp.zeros((1, ch), jnp.float32).at[:, :c_hid].set(b1)
    w2_p = (jnp.zeros((ch, co), jnp.float32).at[:c_hid, :c_out].set(w2)).astype(jnp.bfloat16)
    b2_p = jnp.zeros((1, co), jnp.float32).at[:, :c_out].set(b2)

    cparams_1d = pltpu.CompilerParams(
        dimension_semantics=("parallel",), vmem_limit_bytes=_VMEM_LIMIT)
    cparams_2d = pltpu.CompilerParams(
        dimension_semantics=("parallel", "arbitrary"), vmem_limit_bytes=_VMEM_LIMIT)

    # ---- pass 0: XW = dinv * (X @ W1)  -> [n_pad, ch] bf16 ----
    xw = pl.pallas_call(
        _proj_kernel,
        out_shape=jax.ShapeDtypeStruct((n_pad, ch), jnp.bfloat16),
        grid=(n_pad // tm,),
        in_specs=[
            pl.BlockSpec((tm, ci), lambda i: (i, 0)),
            pl.BlockSpec((ci, ch), lambda i: (0, 0)),
            pl.BlockSpec((tm, 1), lambda i: (i, 0)),
        ],
        out_specs=pl.BlockSpec((tm, ch), lambda i: (i, 0)),
        compiler_params=cparams_1d,
        cost_estimate=pl.CostEstimate(
            flops=2 * n_pad * ci * ch,
            transcendentals=0,
            bytes_accessed=2 * n_pad * (ci + ch) + 2 * ci * ch,
        ),
    )(x_p, w1_p, dinv)

    # ---- pass 1: HW = dinv * (relu(dinv * (C @ XW) + b1) @ W2) -> [n_pad, co] bf16 ----
    if resident:
        xw_spec = pl.BlockSpec((n_pad, ch), lambda i, k: (0, 0))   # DMA'd once
    else:
        xw_spec = pl.BlockSpec((tk, ch), lambda i, k: (k, 0))      # streamed
    hw = pl.pallas_call(
        functools.partial(_agg1_kernel, tk=tk, resident=resident),
        out_shape=jax.ShapeDtypeStruct((n_pad, co), jnp.bfloat16),
        grid=(n_pad // tm, n_pad // tk),
        in_specs=[
            pl.BlockSpec((tm, tk), lambda i, k: (i, k)),   # C row/col block (int8/bf16)
            xw_spec,                                       # XW (resident or per-k)
            pl.BlockSpec((ch, co), lambda i, k: (0, 0)),   # W2 (resident)
            pl.BlockSpec((1, ch), lambda i, k: (0, 0)),    # b1 (resident)
            pl.BlockSpec((tm, 1), lambda i, k: (i, 0)),    # dinv row block
        ],
        out_specs=pl.BlockSpec((tm, co), lambda i, k: (i, 0)),
        scratch_shapes=[pltpu.VMEM((tm, ch), jnp.float32)],
        compiler_params=cparams_2d,
        cost_estimate=pl.CostEstimate(
            flops=2 * n_pad * n_pad * ch + 2 * n_pad * ch * co,
            transcendentals=0,
            bytes_accessed=a_bytes * n_pad * n_pad + 2 * n_pad * (ch + co),
        ),
    )(a_counts, xw, w2_p, b1_p, dinv)

    # ---- pass 2: OUT = dinv * (C @ HW) + b2  -> [n_pad, co] f32 ----
    if resident:
        hw_spec = pl.BlockSpec((n_pad, co), lambda i, k: (0, 0))
    else:
        hw_spec = pl.BlockSpec((tk, co), lambda i, k: (k, 0))
    out = pl.pallas_call(
        functools.partial(_agg2_kernel, tk=tk, resident=resident),
        out_shape=jax.ShapeDtypeStruct((n_pad, co), jnp.float32),
        grid=(n_pad // tm, n_pad // tk),
        in_specs=[
            pl.BlockSpec((tm, tk), lambda i, k: (i, k)),   # C row/col block
            hw_spec,                                       # HW (resident or per-k)
            pl.BlockSpec((1, co), lambda i, k: (0, 0)),    # b2 (resident)
            pl.BlockSpec((tm, 1), lambda i, k: (i, 0)),    # dinv row block
        ],
        out_specs=pl.BlockSpec((tm, co), lambda i, k: (i, 0)),
        compiler_params=cparams_2d,
        cost_estimate=pl.CostEstimate(
            flops=2 * n_pad * n_pad * co,
            transcendentals=0,
            bytes_accessed=a_bytes * n_pad * n_pad + 2 * n_pad * co + 4 * n_pad * co,
        ),
    )(a_counts, hw, b2_p, dinv)

    return out[:n, :c_out]


# ---------------------------------------------------------------------------
# reference (plain JAX, f32) for correctness check
# ---------------------------------------------------------------------------
def fastgcn_reference(x, edge_index, params, edge_weight=None):
    w1, b1, w2, b2 = params
    a_hat = gcn_norm_dense(edge_index, edge_weight, x.shape[0])
    h = jnp.maximum(a_hat @ (x @ w1) + b1, 0.0)
    return a_hat @ (h @ w2) + b2


if __name__ == "__main__":
    key = jax.random.PRNGKey(0)
    k_x, k_e, k_p = jax.random.split(key, 3)

    num_nodes = 16
    in_channels = 8
    hidden_channels = 32
    out_channels = 4
    num_edges = 32

    x = jax.random.normal(k_x, (num_nodes, in_channels), jnp.float32)
    edge_index = jax.random.randint(
        k_e, (2, num_edges), 0, num_nodes, dtype=jnp.int32
    )
    params = init_params(k_p, in_channels, hidden_channels, out_channels)

    # graph prep is hoisted out of the forward pass (built once, reused per call)
    a_counts, dinv = prepare_graph(edge_index, num_nodes, edge_weight=None)

    fwd = jax.jit(fastgcn_forward)
    out = fwd(x, params, a_counts, dinv)
    jax.block_until_ready(out)
    assert out.shape == (num_nodes, out_channels)

    ref = fastgcn_reference(x, edge_index, params)
    assert jnp.allclose(out, ref, rtol=1e-1, atol=1e-1), (
        float(jnp.max(jnp.abs(out - ref)))
    )
    print("KERNEL_OK")
</pallas_src>

<mosaic_0001>
module attributes {stable_mosaic.version = 11 : i64} {
  func.func @_proj_kernel(%arg0: i32, %arg1: memref<128x128xbf16, #tpu.memory_space<vmem>>, %arg2: memref<128x128xbf16, #tpu.memory_space<vmem>>, %arg3: memref<128x1xf32, #tpu.memory_space<vmem>>, %arg4: memref<128x128xbf16, #tpu.memory_space<vmem>>) attributes {dimension_semantics = [#tpu.dimension_semantics<parallel>], iteration_bounds = array<i64: 1>, scalar_prefetch = 0 : i64, scratch_operands = 0 : i64, tpu.core_type = #tpu.core_type<tc>, window_params = [{transform_indices = @transform_0, window_bounds = array<i64: 128, 128>}, {pipeline_mode = #tpu.pipeline_mode<synchronous>, transform_indices = @transform_1, window_bounds = array<i64: 128, 128>}, {transform_indices = @transform_2, window_bounds = array<i64: 128, 1>}, {transform_indices = @transform_3, window_bounds = array<i64: 128, 128>}]} {
    %c0 = arith.constant 0 : index
    %c0_0 = arith.constant 0 : index
    %0 = vector.load %arg1[%c0, %c0_0] : memref<128x128xbf16, #tpu.memory_space<vmem>>, vector<128x128xbf16>
    %c0_1 = arith.constant 0 : index
    %c0_2 = arith.constant 0 : index
    %1 = vector.load %arg2[%c0_1, %c0_2] : memref<128x128xbf16, #tpu.memory_space<vmem>>, vector<128x128xbf16>
    %cst = arith.constant dense<0.000000e+00> : vector<128x128xf32>
    %2 = tpu.matmul %0, %1, %cst {dimension_numbers = #tpu.dot_dimension_numbers<[1], [0], [0], [1], [0, 0, 1, 1], [], []>} : vector<128x128xbf16>, vector<128x128xbf16>, vector<128x128xf32> -> vector<128x128xf32>
    %c0_3 = arith.constant 0 : index
    %c0_4 = arith.constant 0 : index
    %3 = vector.load %arg3[%c0_3, %c0_4] : memref<128x1xf32, #tpu.memory_space<vmem>>, vector<128x1xf32>
    %4 = vector.broadcast %3 : vector<128x1xf32> to vector<128x128xf32>
    %5 = arith.mulf %4, %2 : vector<128x128xf32>
    %6 = arith.truncf %5 : vector<128x128xf32> to vector<128x128xbf16>
    %c0_5 = arith.constant 0 : index
    %c0_6 = arith.constant 0 : index
    %7 = vector.load %arg4[%c0_5, %c0_6] : memref<128x128xbf16, #tpu.memory_space<vmem>>, vector<128x128xbf16>
    tpu.vector_store %arg4[%c0_5, %c0_6], %6 {strides = array<i32>} : memref<128x128xbf16, #tpu.memory_space<vmem>>, vector<128x128xbf16>,
    return
  }
  func.func @transform_0(%arg0: i32) -> (i32, i32) {
    %c0_i32 = arith.constant 0 : i32
    %c0_i32_0 = arith.constant 0 : i32
    return %arg0, %c0_i32 : i32, i32
  }
  func.func @transform_1(%arg0: i32) -> (i32, i32) {
    %c0_i32 = arith.constant 0 : i32
    %c0_i32_0 = arith.constant 0 : i32
    %c0_i32_1 = arith.constant 0 : i32
    return %c0_i32, %c0_i32_0 : i32, i32
  }
  func.func @transform_2(%arg0: i32) -> (i32, i32) {
    %c0_i32 = arith.constant 0 : i32
    %c0_i32_0 = arith.constant 0 : i32
    return %arg0, %c0_i32 : i32, i32
  }
  func.func @transform_3(%arg0: i32) -> (i32, i32) {
    %c0_i32 = arith.constant 0 : i32
    %c0_i32_0 = arith.constant 0 : i32
    return %arg0, %c0_i32 : i32, i32
  }
}

module attributes {stable_mosaic.version = 11 : i64} {
  func.func @_agg1_kernel(%arg0: i32, %arg1: i32, %arg2: memref<128x128xi8, #tpu.memory_space<vmem>>, %arg3: memref<128x128xbf16, #tpu.memory_space<vmem>>, %arg4: memref<128x128xbf16, #tpu.memory_space<vmem>>, %arg5: memref<1x128xf32, #tpu.memory_space<vmem>>, %arg6: memref<128x1xf32, #tpu.memory_space<vmem>>, %arg7: memref<128x128xbf16, #tpu.memory_space<vmem>>, %arg8: memref<128x128xf32, #tpu.memory_space<vmem>>) attributes {dimension_semantics = [#tpu.dimension_semantics<parallel>, #tpu.dimension_semantics<arbitrary>], iteration_bounds = array<i64: 1, 1>, scalar_prefetch = 0 : i64, scratch_operands = 1 : i64, tpu.core_type = #tpu.core_type<tc>, window_params = [{transform_indices = @transform_0, window_bounds = array<i64: 128, 128>}, {pipeline_mode = #tpu.pipeline_mode<synchronous>, transform_indices = @transform_1, window_bounds = array<i64: 128, 128>}, {pipeline_mode = #tpu.pipeline_mode<synchronous>, transform_indices = @transform_2, window_bounds = array<i64: 128, 128>}, {pipeline_mode = #tpu.pipeline_mode<synchronous>, transform_indices = @transform_3, window_bounds = array<i64: 1, 128>}, {transform_indices = @transform_4, window_bounds = array<i64: 128, 1>}, {transform_indices = @transform_5, window_bounds = array<i64: 128, 128>}]} {
    %c0_i32 = arith.constant 0 : i32
    %0 = arith.cmpi eq, %arg1, %c0_i32 : i32
    %1 = arith.extui %0 : i1 to i32
    %c0_i32_0 = arith.constant 0 : i32
    %2 = arith.cmpi ne, %1, %c0_i32_0 : i32
    scf.if %2 {
      %cst_9 = arith.constant 0.000000e+00 : f32
      %17 = vector.broadcast %cst_9 : f32 to vector<128x128xf32>
      %c0_10 = arith.constant 0 : index
      %c0_11 = arith.constant 0 : index
      %18 = vector.load %arg8[%c0_10, %c0_11] : memref<128x128xf32, #tpu.memory_space<vmem>>, vector<128x128xf32>
      tpu.vector_store %arg8[%c0_10, %c0_11], %17 {strides = array<i32>} : memref<128x128xf32, #tpu.memory_space<vmem>>, vector<128x128xf32>,
    } else {
    }
    %c0 = arith.constant 0 : index
    %c0_1 = arith.constant 0 : index
    %3 = vector.load %arg2[%c0, %c0_1] : memref<128x128xi8, #tpu.memory_space<vmem>>, vector<128x128xi8>
    %4 = arith.sitofp %3 : vector<128x128xi8> to vector<128x128xf32>
    %5 = arith.truncf %4 : vector<128x128xf32> to vector<128x128xbf16>
    %c128_i32 = arith.constant 128 : i32
    %6 = arith.muli %arg1, %c128_i32 : i32
    %7 = tpu.assume_multiple %6, 128 : i32
    %8 = arith.index_cast %7 : i32 to index
    %c0_2 = arith.constant 0 : index
    %9 = vector.load %arg3[%8, %c0_2] : memref<128x128xbf16, #tpu.memory_space<vmem>>, vector<128x128xbf16>
    %c0_3 = arith.constant 0 : index
    %c0_4 = arith.constant 0 : index
    %10 = vector.load %arg8[%c0_3, %c0_4] : memref<128x128xf32, #tpu.memory_space<vmem>>, vector<128x128xf32>
    %cst = arith.constant dense<0.000000e+00> : vector<128x128xf32>
    %11 = tpu.matmul %5, %9, %cst {dimension_numbers = #tpu.dot_dimension_numbers<[1], [0], [0], [1], [0, 0, 1, 1], [], []>} : vector<128x128xbf16>, vector<128x128xbf16>, vector<128x128xf32> -> vector<128x128xf32>
    %12 = arith.addf %10, %11 : vector<128x128xf32>
    %c0_5 = arith.constant 0 : index
    %c0_6 = arith.constant 0 : index
    %13 = vector.load %arg8[%c0_5, %c0_6] : memref<128x128xf32, #tpu.memory_space<vmem>>, vector<128x128xf32>
    tpu.vector_store %arg8[%c0_5, %c0_6], %12 {strides = array<i32>} : memref<128x128xf32, #tpu.memory_space<vmem>>, vector<128x128xf32>,
    %c0_i32_7 = arith.constant 0 : i32
    %14 = arith.cmpi eq, %arg1, %c0_i32_7 : i32
    %15 = arith.extui %14 : i1 to i32
    %c0_i32_8 = arith.constant 0 : i32
    %16 = arith.cmpi ne, %15, %c0_i32_8 : i32
    scf.if %16 {
      %c0_9 = arith.constant 0 : index
      %c0_10 = arith.constant 0 : index
      %17 = vector.load %arg6[%c0_9, %c0_10] : memref<128x1xf32, #tpu.memory_space<vmem>>, vector<128x1xf32>
      %c0_11 = arith.constant 0 : index
      %c0_12 = arith.constant 0 : index
      %18 = vector.load %arg8[%c0_11, %c0_12] : memref<128x128xf32, #tpu.memory_space<vmem>>, vector<128x128xf32>
      %19 = vector.broadcast %17 : vector<128x1xf32> to vector<128x128xf32>
      %20 = arith.mulf %19, %18 : vector<128x128xf32>
      %c0_13 = arith.constant 0 : index
      %c0_14 = arith.constant 0 : index
      %21 = vector.load %arg5[%c0_13, %c0_14] : memref<1x128xf32, #tpu.memory_space<vmem>>, vector<1x128xf32>
      %22 = vector.broadcast %21 : vector<1x128xf32> to vector<128x128xf32>
      %23 = arith.addf %20, %22 : vector<128x128xf32>
      %cst_15 = arith.constant 0.000000e+00 : f32
      %24 = vector.broadcast %cst_15 : f32 to vector<128x128xf32>
      %25 = arith.maximumf %23, %24 : vector<128x128xf32>
      %26 = arith.truncf %25 : vector<128x128xf32> to vector<128x128xbf16>
      %c0_16 = arith.constant 0 : index
      %c0_17 = arith.constant 0 : index
      %27 = vector.load %arg4[%c0_16, %c0_17] : memref<128x128xbf16, #tpu.memory_space<vmem>>, vector<128x128xbf16>
      %cst_18 = arith.constant dense<0.000000e+00> : vector<128x128xf32>
      %28 = tpu.matmul %26, %27, %cst_18 {dimension_numbers = #tpu.dot_dimension_numbers<[1], [0], [0], [1], [0, 0, 1, 1], [], []>} : vector<128x128xbf16>, vector<128x128xbf16>, vector<128x128xf32> -> vector<128x128xf32>
      %c0_19 = arith.constant 0 : index
      %c0_20 = arith.constant 0 : index
      %29 = vector.load %arg6[%c0_19, %c0_20] : memref<128x1xf32, #tpu.memory_space<vmem>>, vector<128x1xf32>
      %30 = vector.broadcast %29 : vector<128x1xf32> to vector<128x128xf32>
      %31 = arith.mulf %30, %28 : vector<128x128xf32>
      %32 = arith.truncf %31 : vector<128x128xf32> to vector<128x128xbf16>
      %c0_21 = arith.constant 0 : index
      %c0_22 = arith.constant 0 : index
      %33 = vector.load %arg7[%c0_21, %c0_22] : memref<128x128xbf16, #tpu.memory_space<vmem>>, vector<128x128xbf16>
      tpu.vector_store %arg7[%c0_21, %c0_22], %32 {strides = array<i32>} : memref<128x128xbf16, #tpu.memory_space<vmem>>, vector<128x128xbf16>,
    } else {
    }
    return
  }
  func.func @transform_0(%arg0: i32, %arg1: i32) -> (i32, i32) {
    %c0_i32 = arith.constant 0 : i32
    return %arg0, %arg1 : i32, i32
  }
  func.func @transform_1(%arg0: i32, %arg1: i32) -> (i32, i32) {
    %c0_i32 = arith.constant 0 : i32
    %c0_i32_0 = arith.constant 0 : i32
    %c0_i32_1 = arith.constant 0 : i32
    return %c0_i32, %c0_i32_0 : i32, i32
  }
  func.func @transform_2(%arg0: i32, %arg1: i32) -> (i32, i32) {
    %c0_i32 = arith.constant 0 : i32
    %c0_i32_0 = arith.constant 0 : i32
    %c0_i32_1 = arith.constant 0 : i32
    return %c0_i32, %c0_i32_0 : i32, i32
  }
  func.func @transform_3(%arg0: i32, %arg1: i32) -> (i32, i32) {
    %c0_i32 = arith.constant 0 : i32
    %c0_i32_0 = arith.constant 0 : i32
    %c0_i32_1 = arith.constant 0 : i32
    return %c0_i32, %c0_i32_0 : i32, i32
  }
  func.func @transform_4(%arg0: i32, %arg1: i32) -> (i32, i32) {
    %c0_i32 = arith.constant 0 : i32
    %c0_i32_0 = arith.constant 0 : i32
    return %arg0, %c0_i32 : i32, i32
  }
  func.func @transform_5(%arg0: i32, %arg1: i32) -> (i32, i32) {
    %c0_i32 = arith.constant 0 : i32
    %c0_i32_0 = arith.constant 0 : i32
    return %arg0, %c0_i32 : i32, i32
  }
}

module attributes {stable_mosaic.version = 11 : i64} {
  func.func @_agg2_kernel(%arg0: i32, %arg1: i32, %arg2: memref<128x128xi8, #tpu.memory_space<vmem>>, %arg3: memref<128x128xbf16, #tpu.memory_space<vmem>>, %arg4: memref<1x128xf32, #tpu.memory_space<vmem>>, %arg5: memref<128x1xf32, #tpu.memory_space<vmem>>, %arg6: memref<128x128xf32, #tpu.memory_space<vmem>>) attributes {dimension_semantics = [#tpu.dimension_semantics<parallel>, #tpu.dimension_semantics<arbitrary>], iteration_bounds = array<i64: 1, 1>, scalar_prefetch = 0 : i64, scratch_operands = 0 : i64, tpu.core_type = #tpu.core_type<tc>, window_params = [{transform_indices = @transform_0, window_bounds = array<i64: 128, 128>}, {pipeline_mode = #tpu.pipeline_mode<synchronous>, transform_indices = @transform_1, window_bounds = array<i64: 128, 128>}, {pipeline_mode = #tpu.pipeline_mode<synchronous>, transform_indices = @transform_2, window_bounds = array<i64: 1, 128>}, {transform_indices = @transform_3, window_bounds = array<i64: 128, 1>}, {transform_indices = @transform_4, window_bounds = array<i64: 128, 128>}]} {
    %c0_i32 = arith.constant 0 : i32
    %0 = arith.cmpi eq, %arg1, %c0_i32 : i32
    %1 = arith.extui %0 : i1 to i32
    %c0_i32_0 = arith.constant 0 : i32
    %2 = arith.cmpi ne, %1, %c0_i32_0 : i32
    scf.if %2 {
      %cst_9 = arith.constant 0.000000e+00 : f32
      %17 = vector.broadcast %cst_9 : f32 to vector<128x128xf32>
      %c0_10 = arith.constant 0 : index
      %c0_11 = arith.constant 0 : index
      %18 = vector.load %arg6[%c0_10, %c0_11] : memref<128x128xf32, #tpu.memory_space<vmem>>, vector<128x128xf32>
      tpu.vector_store %arg6[%c0_10, %c0_11], %17 {strides = array<i32>} : memref<128x128xf32, #tpu.memory_space<vmem>>, vector<128x128xf32>,
    } else {
    }
    %c0 = arith.constant 0 : index
    %c0_1 = arith.constant 0 : index
    %3 = vector.load %arg2[%c0, %c0_1] : memref<128x128xi8, #tpu.memory_space<vmem>>, vector<128x128xi8>
    %4 = arith.sitofp %3 : vector<128x128xi8> to vector<128x128xf32>
    %5 = arith.truncf %4 : vector<128x128xf32> to vector<128x128xbf16>
    %c128_i32 = arith.constant 128 : i32
    %6 = arith.muli %arg1, %c128_i32 : i32
    %7 = tpu.assume_multiple %6, 128 : i32
    %8 = arith.index_cast %7 : i32 to index
    %c0_2 = arith.constant 0 : index
    %9 = vector.load %arg3[%8, %c0_2] : memref<128x128xbf16, #tpu.memory_space<vmem>>, vector<128x128xbf16>
    %c0_3 = arith.constant 0 : index
    %c0_4 = arith.constant 0 : index
    %10 = vector.load %arg6[%c0_3, %c0_4] : memref<128x128xf32, #tpu.memory_space<vmem>>, vector<128x128xf32>
    %cst = arith.constant dense<0.000000e+00> : vector<128x128xf32>
    %11 = tpu.matmul %5, %9, %cst {dimension_numbers = #tpu.dot_dimension_numbers<[1], [0], [0], [1], [0, 0, 1, 1], [], []>} : vector<128x128xbf16>, vector<128x128xbf16>, vector<128x128xf32> -> vector<128x128xf32>
    %12 = arith.addf %10, %11 : vector<128x128xf32>
    %c0_5 = arith.constant 0 : index
    %c0_6 = arith.constant 0 : index
    %13 = vector.load %arg6[%c0_5, %c0_6] : memref<128x128xf32, #tpu.memory_space<vmem>>, vector<128x128xf32>
    tpu.vector_store %arg6[%c0_5, %c0_6], %12 {strides = array<i32>} : memref<128x128xf32, #tpu.memory_space<vmem>>, vector<128x128xf32>,
    %c0_i32_7 = arith.constant 0 : i32
    %14 = arith.cmpi eq, %arg1, %c0_i32_7 : i32
    %15 = arith.extui %14 : i1 to i32
    %c0_i32_8 = arith.constant 0 : i32
    %16 = arith.cmpi ne, %15, %c0_i32_8 : i32
    scf.if %16 {
      %c0_9 = arith.constant 0 : index
      %c0_10 = arith.constant 0 : index
      %17 = vector.load %arg5[%c0_9, %c0_10] : memref<128x1xf32, #tpu.memory_space<vmem>>, vector<128x1xf32>
      %c0_11 = arith.constant 0 : index
      %c0_12 = arith.constant 0 : index
      %18 = vector.load %arg6[%c0_11, %c0_12] : memref<128x128xf32, #tpu.memory_space<vmem>>, vector<128x128xf32>
      %19 = vector.broadcast %17 : vector<128x1xf32> to vector<128x128xf32>
      %20 = arith.mulf %19, %18 : vector<128x128xf32>
      %c0_13 = arith.constant 0 : index
      %c0_14 = arith.constant 0 : index
      %21 = vector.load %arg4[%c0_13, %c0_14] : memref<1x128xf32, #tpu.memory_space<vmem>>, vector<1x128xf32>
      %22 = vector.broadcast %21 : vector<1x128xf32> to vector<128x128xf32>
      %23 = arith.addf %20, %22 : vector<128x128xf32>
      %c0_15 = arith.constant 0 : index
      %c0_16 = arith.constant 0 : index
      %24 = vector.load %arg6[%c0_15, %c0_16] : memref<128x128xf32, #tpu.memory_space<vmem>>, vector<128x128xf32>
      tpu.vector_store %arg6[%c0_15, %c0_16], %23 {strides = array<i32>} : memref<128x128xf32, #tpu.memory_space<vmem>>, vector<128x128xf32>,
    } else {
    }
    return
  }
  func.func @transform_0(%arg0: i32, %arg1: i32) -> (i32, i32) {
    %c0_i32 = arith.constant 0 : i32
    return %arg0, %arg1 : i32, i32
  }
  func.func @transform_1(%arg0: i32, %arg1: i32) -> (i32, i32) {
    %c0_i32 = arith.constant 0 : i32
    %c0_i32_0 = arith.constant 0 : i32
    %c0_i32_1 = arith.constant 0 : i32
    return %c0_i32, %c0_i32_0 : i32, i32
  }
  func.func @transform_2(%arg0: i32, %arg1: i32) -> (i32, i32) {
    %c0_i32 = arith.constant 0 : i32
    %c0_i32_0 = arith.constant 0 : i32
    %c0_i32_1 = arith.constant 0 : i32
    return %c0_i32, %c0_i32_0 : i32, i32
  }
  func.func @transform_3(%arg0: i32, %arg1: i32) -> (i32, i32) {
    %c0_i32 = arith.constant 0 : i32
    %c0_i32_0 = arith.constant 0 : i32
    return %arg0, %c0_i32 : i32, i32
  }
  func.func @transform_4(%arg0: i32, %arg1: i32) -> (i32, i32) {
    %c0_i32 = arith.constant 0 : i32
    %c0_i32_0 = arith.constant 0 : i32
    return %arg0, %c0_i32 : i32, i32
  }
}

</mosaic_0001>

<bundles_post_ra>
// kernel: fastgcn_forward.3
= control target key start
LH: loop header
LB: loop body
LE: loop exit
PB: predicated region body
PF: predicated region fallthrough
CT: control target
= control target key end

     0   :  { %v614_v1 = vmov 0   ;;  %s755_s1 = inlined_call_operand.vmem [shape: bf16[128,128], index: 1, kind: input, shape index: {}]   ;;  %s756_s0 = inlined_call_operand.vmem [shape: bf16[128,128], index: 0, kind: input, shape index: {}]   ;;  %s757_s2 = inlined_call_operand.vmem [shape: f32[128,1], index: 2, kind: input, shape index: {}]   ;;  %s758_s3 = inlined_call_operand.vmem [shape: bf16[128,128], index: 3, kind: output, shape index: {}]  }
   0x1   :  { %v598_v0 = vld [vmem:[%s755_s1] sm:$0xff]   ;;  %597 = vset.pattern.permute.xlu1 %v614_v1  ;;  %596 = vset.pattern.permute.xlu0 %v614_v1  ;;  %v599_v2 = vld [vmem:[%s755_s1 + $0x8] sm:$0xff]   ;;  %v600_v3 = vld [vmem:[%s755_s1 + $0x10] sm:$0xff]  }
   0x2   :  { %547 = vmatprep.subr.bf16.mxu0 %v598_v0  ;;  %579 = vmatprep.subr.bf16.mxu1 %v598_v0  ;;  %v601_v4 = vld [vmem:[%s755_s1 + $0x18] sm:$0xff]   ;;  %v606_v5 = vld [vmem:[%s756_s0] sm:$0xff]   ;;  %v603_v8 = vld [vmem:[%s755_s1 + $0x28] sm:$0xff]  }
   0x3   :  { %548 = vmatpush3.bf16.msra.mxu0 %v598_v0  ;;  %587 = vmatpush3.bf16.msra.mxu1 %v598_v0  ;;  %v607_v6 = vld [vmem:[%s756_s0 + $0x20] sm:$0xff]   ;;  %v242_v9 = vld [vmem:[%s757_s2 + $0x10] sm:$0xff]  ;;  %v243_v11 = vld [vmem:[%s757_s2 + $0x18] sm:$0xff] }
   0x4   :  { %549 = vmatprep.subr.bf16.mxu0 %v599_v2  ;;  %580 = vmatprep.subr.bf16.mxu1 %v599_v2  ;;  %v602_v7 = vld [vmem:[%s755_s1 + $0x20] sm:$0xff]   ;;  %v241_v12 = vld [vmem:[%s757_s2 + $0x8] sm:$0xff]  ;;  %v604_v13 = vld [vmem:[%s755_s1 + $0x30] sm:$0xff]  }
   0x5   :  { %563 = vmatprep.mubr.bf16.mxu0 %v606_v5  ;;  %571 = vmatprep.mubr.bf16.mxu1 %v607_v6  ;;  %v240_v10 = vld [vmem:[%s757_s2] sm:$0xff]  ;;  %v245_v14 = vld [vmem:[%s757_s2 + $0x28] sm:$0xff]  ;;  %v605_v16 = vld [vmem:[%s755_s1 + $0x38] sm:$0xff]  }
   0x6   :  { %268 = vperm.xlu1 %597, %v242_v9   ;;  %258 = vperm.xlu0 %596, %v240_v10   ;;  %v244_v15 = vld [vmem:[%s757_s2 + $0x20] sm:$0xff]  ;;  %v247_v17 = vld [vmem:[%s757_s2 + $0x38] sm:$0xff]  ;;  %v246_v18 = vld [vmem:[%s757_s2 + $0x30] sm:$0xff] }
   0x7   :  { %550 = vmatpush3.bf16.msra.mxu0 %v599_v2  ;;  %588 = vmatpush3.bf16.msra.mxu1 %v599_v2  ;;  %v608_v19 = vld [vmem:[%s756_s0 + $0x8] sm:$0xff]   ;;  %v248_v22 = vld [vmem:[%s757_s2 + $0x40] sm:$0xff]  ;;  %v610_v23 = vld [vmem:[%s756_s0 + $0x10] sm:$0xff]  }
   0x8   :  { %551 = vmatprep.subr.bf16.mxu0 %v600_v3  ;;  %581 = vmatprep.subr.bf16.mxu1 %v600_v3  ;;  %v609_v20 = vld [vmem:[%s756_s0 + $0x28] sm:$0xff]   ;;  %v611_v24 = vld [vmem:[%s756_s0 + $0x30] sm:$0xff]   ;;  %v251_v25 = vld [vmem:[%s757_s2 + $0x58] sm:$0xff] }
   0x9   :  { %v249_v21 = vld [vmem:[%s757_s2 + $0x48] sm:$0xff]  ;;  %v250_v26 = vld [vmem:[%s757_s2 + $0x50] sm:$0xff]  ;;  %v612_v27 = vld [vmem:[%s756_s0 + $0x18] sm:$0xff]  }
   0xa   :  { %273 = vperm.xlu1 %597, %v243_v11   ;;  %263 = vperm.xlu0 %596, %v241_v12   ;;  %v613_v28 = vld [vmem:[%s756_s0 + $0x38] sm:$0xff]   ;;  %v253_v29 = vld [vmem:[%s757_s2 + $0x68] sm:$0xff]  ;;  %v252_v30 = vld [vmem:[%s757_s2 + $0x60] sm:$0xff] }
   0xb   :  { %552 = vmatpush3.bf16.msra.mxu0 %v600_v3  ;;  %589 = vmatpush3.bf16.msra.mxu1 %v600_v3  ;;  %v255_v31 = vld [vmem:[%s757_s2 + $0x78] sm:$0xff]  ;;  %v254_v32 = vld [vmem:[%s757_s2 + $0x70] sm:$0xff] }
   0xc   :  { %553 = vmatprep.subr.bf16.mxu0 %v601_v4  ;;  %582 = vmatprep.subr.bf16.mxu1 %v601_v4 }
   0xe   :  { %283 = vperm.xlu1 %597, %v245_v14   ;;  %278 = vperm.xlu0 %596, %v244_v15  }
   0xf   :  { %554 = vmatpush3.bf16.msra.mxu0 %v601_v4  ;;  %590 = vmatpush3.bf16.msra.mxu1 %v601_v4 }
  0x10   :  { %555 = vmatprep.subr.bf16.mxu0 %v602_v7  ;;  %583 = vmatprep.subr.bf16.mxu1 %v602_v7 }
  0x12   :  { %293 = vperm.xlu1 %597, %v247_v17   ;;  %288 = vperm.xlu0 %596, %v246_v18  }
  0x13   :  { %556 = vmatpush3.bf16.msra.mxu0 %v602_v7  ;;  %591 = vmatpush3.bf16.msra.mxu1 %v602_v7 }
  0x14   :  { %557 = vmatprep.subr.bf16.mxu0 %v603_v8  ;;  %584 = vmatprep.subr.bf16.mxu1 %v603_v8 }
  0x16   :  { %303 = vperm.xlu1 %597, %v249_v21   ;;  %298 = vperm.xlu0 %596, %v248_v22  }
  0x17   :  { %558 = vmatpush3.bf16.msra.mxu0 %v603_v8  ;;  %592 = vmatpush3.bf16.msra.mxu1 %v603_v8 }
  0x18   :  { %559 = vmatprep.subr.bf16.mxu0 %v604_v13  ;;  %585 = vmatprep.subr.bf16.mxu1 %v604_v13 }
  0x1a   :  { %313 = vperm.xlu1 %597, %v251_v25   ;;  %308 = vperm.xlu0 %596, %v250_v26  }
  0x1b   :  { %560 = vmatpush3.bf16.msra.mxu0 %v604_v13  ;;  %593 = vmatpush3.bf16.msra.mxu1 %v604_v13 }
  0x1c   :  { %561 = vmatprep.subr.bf16.mxu0 %v605_v16  ;;  %586 = vmatprep.subr.bf16.mxu1 %v605_v16 }
  0x1e   :  { %323 = vperm.xlu1 %597, %v253_v29   ;;  %318 = vperm.xlu0 %596, %v252_v30  }
  0x1f   :  { %562 = vmatpush3.bf16.msra.mxu0 %v605_v16  ;;  %594 = vmatpush3.bf16.msra.mxu1 %v605_v16 }
  0x22   :  { %564 = vmatmul.mubr.bf16.vlgmr.msra.gmra.mrb[0].mxu0 %v608_v19  ;;  %572 = vmatmul.mubr.bf16.vlgmr.msra.gmra.mrb[0].mxu1 %v609_v20 }
  0x23   :  { %567 = vmatprep.mubr.bf16.mxu0 %v610_v23  ;;  %575 = vmatprep.mubr.bf16.mxu1 %v611_v24 }
  0x24   :  { %333 = vperm.xlu1 %597, %v255_v31   ;;  %328 = vperm.xlu0 %596, %v254_v32  }
  0x2a   :  { %568 = vmatmul.mubr.bf16.gmra.mrb[4].mxu0 %v612_v27  ;;  %576 = vmatmul.mubr.bf16.gmra.mrb[4].mxu1 %v613_v28 }
  0x85   :  { %v269_v33 = vpop.permute.xlu1 %268  ;;  %v259_v34 = vpop.permute.xlu0 %258 }
  0x89   :  { %v274_v35 = vpop.permute.xlu1 %273  ;;  %v264_v36 = vpop.permute.xlu0 %263 }
  0x8d   :  { %v284_v37 = vpop.permute.xlu1 %283  ;;  %v279_v38 = vpop.permute.xlu0 %278 }
  0x91   :  { %v294_v39 = vpop.permute.xlu1 %293  ;;  %v289_v40 = vpop.permute.xlu0 %288 }
  0x95   :  { %v304_v41 = vpop.permute.xlu1 %303  ;;  %v299_v42 = vpop.permute.xlu0 %298 }
  0x99   :  { %v314_v43 = vpop.permute.xlu1 %313  ;;  %v309_v44 = vpop.permute.xlu0 %308 }
  0x9d   :  { %v324_v45 = vpop.permute.xlu1 %323  ;;  %v319_v46 = vpop.permute.xlu0 %318 }
  0xa3   :  { %v334_v3 = vpop.permute.xlu1 %333  ;;  %v329_v4 = vpop.permute.xlu0 %328 }
  0xf5   :  { %v565_v47 = vpop.f32.mrb[0].mxu0  ;;  %v573_v48 = vpop.f32.mrb[0].mxu1 }
  0xf6   :  { %v177_v49 = vpop.f32.mrb[1].mxu0  ;;  %v209_v50 = vpop.f32.mrb[1].mxu1  ;;  %v338_v53 = vmul.f32 %v565_v47, %v269_v33  ;;  %v346_v54 = vmul.f32 %v573_v48, %v309_v44 }
  0xf7   :  { %v566_v51 = vpop.f32.mrb[2].mxu0  ;;  %v574_v52 = vpop.f32.mrb[2].mxu1  ;;  %v336_v59 = vmul.f32 %v259_v34, %v177_v49  ;;  %v344_v60 = vmul.f32 %v299_v42, %v209_v50 }
  0xf8   :  { %v339_v55 = vmul.f32 %v566_v51, %v274_v35  ;;  %v347_v56 = vmul.f32 %v574_v52, %v314_v43  ;;  %v180_v57 = vpop.f32.mrb[3].mxu0  ;;  %v212_v58 = vpop.f32.mrb[3].mxu1 }
  0xf9   :  { %v337_v61 = vmul.f32 %v264_v36, %v180_v57  ;;  %v345_v62 = vmul.f32 %v304_v41, %v212_v58 }
  0xfa   :  { %v492_v63 = vpack.c.bf16 %v339_v55, %v338_v53  ;;  %v512_v0 = vpack.c.bf16 %v347_v56, %v346_v54 }
  0xfb   :  { %v487_v1 = vpack.c.bf16 %v337_v61, %v336_v59  ;;  %v507_v2 = vpack.c.bf16 %v345_v62, %v344_v60 }
  0xfc   :  { %524 = vst [vmem:[%s758_s3 + $0x8] sm:$0xff] %v492_v63   ;;  %528 = vst [vmem:[%s758_s3 + $0x28] sm:$0xff] %v512_v0  }
  0xfd   :  { %488 = vst [vmem:[%s758_s3] sm:$0xff] %v487_v1   ;;  %527 = vst [vmem:[%s758_s3 + $0x20] sm:$0xff] %v507_v2   ;;  %v569_v5 = vpop.f32.mrb[4].mxu0  ;;  %v577_v6 = vpop.f32.mrb[4].mxu1 }
  0xfe   :  { %v193_v7 = vpop.f32.mrb[5].mxu0  ;;  %v225_v8 = vpop.f32.mrb[5].mxu1  ;;  %v342_v11 = vmul.f32 %v569_v5, %v289_v40  ;;  %v350_v12 = vmul.f32 %v577_v6, %v329_v4 }
  0xff   :  { %v570_v9 = vpop.f32.mrb[6].mxu0  ;;  %v578_v10 = vpop.f32.mrb[6].mxu1  ;;  %v340_v17 = vmul.f32 %v279_v38, %v193_v7  ;;  %v348_v18 = vmul.f32 %v319_v46, %v225_v8 }
 0x100   :  { %v343_v13 = vmul.f32 %v570_v9, %v294_v39  ;;  %v351_v14 = vmul.f32 %v578_v10, %v334_v3  ;;  %v196_v15 = vpop.f32.mrb[7].mxu0  ;;  %v228_v16 = vpop.f32.mrb[7].mxu1 }
 0x101   :  { %v341_v19 = vmul.f32 %v284_v37, %v196_v15  ;;  %v349_v20 = vmul.f32 %v324_v45, %v228_v16 }
 0x102   :  { %v502_v21 = vpack.c.bf16 %v343_v13, %v342_v11  ;;  %v522_v22 = vpack.c.bf16 %v351_v14, %v350_v12 }
 0x103   :  { %v497_v23 = vpack.c.bf16 %v341_v19, %v340_v17  ;;  %v517_v24 = vpack.c.bf16 %v349_v20, %v348_v18 }
 0x104   :  { %526 = vst [vmem:[%s758_s3 + $0x18] sm:$0xff] %v502_v21   ;;  %530 = vst [vmem:[%s758_s3 + $0x38] sm:$0xff] %v522_v22  }
 0x105   :  { %525 = vst [vmem:[%s758_s3 + $0x10] sm:$0xff] %v497_v23   ;;  %529 = vst [vmem:[%s758_s3 + $0x30] sm:$0xff] %v517_v24  }

// kernel: fastgcn_forward.5
= control target key start
LH: loop header
LB: loop body
LE: loop exit
PB: predicated region body
PF: predicated region fallthrough
CT: control target
= control target key end

     0   :  { %v525_v1 = vmov 0   ;;  %s697_s1 = inlined_call_operand.vmem [shape: bf16[128,128], index: 1, kind: input, shape index: {}]   ;;  %s698_s0 = inlined_call_operand.vmem [shape: s8[128,128], index: 0, kind: input, shape index: {}]   ;;  %s699_s3 = inlined_call_operand.vmem [shape: f32[128,1], index: 3, kind: input, shape index: {}]   ;;  %s700_s2 = inlined_call_operand.vmem [shape: f32[1,128], index: 2, kind: input, shape index: {}]   ;;  %s701_s4 = inlined_call_operand.vmem [shape: f32[128,128], index: 4, kind: output, shape index: {}]  }
   0x1   :  { %v517_v0 = vld [vmem:[%s697_s1] sm:$0xff]   ;;  %516 = vset.pattern.permute.xlu1 %v525_v1  ;;  %515 = vset.pattern.permute.xlu0 %v525_v1  ;;  %v518_v2 = vld [vmem:[%s697_s1 + $0x8] sm:$0xff]   ;;  %v519_v3 = vld [vmem:[%s697_s1 + $0x10] sm:$0xff]  }
   0x2   :  { %465 = vmatprep.subr.bf16.mxu0 %v517_v0  ;;  %497 = vmatprep.subr.bf16.mxu1 %v517_v0  ;;  %v520_v4 = vld [vmem:[%s697_s1 + $0x18] sm:$0xff]   ;;  %v566_v5 = vld [vmem:[%s698_s0] sm:$0xff]  ;;  %v571_v6 = vld [vmem:[%s698_s0 + $0x10] sm:$0xff] }
   0x3   :  { %466 = vmatpush3.bf16.msra.mxu0 %v517_v0  ;;  %505 = vmatpush3.bf16.msra.mxu1 %v517_v0  ;;  %v42_v7 = vunpack.c.l.s8.bf16 %v566_v5  ;;  %v46_v8 = vunpack.c.l.s8.bf16 %v571_v6  ;;  %v269_v9 = vld [vmem:[%s699_s3 + $0x10] sm:$0xff]  ;;  %v267_v10 = vld [vmem:[%s699_s3] sm:$0xff]  ;;  %v270_v11 = vld [vmem:[%s699_s3 + $0x18] sm:$0xff]  ;;  %v43_v27 = vunpack.c.h.s8.bf16 %v566_v5  ;;  %v47_v28 = vunpack.c.h.s8.bf16 %v571_v6 }
   0x4   :  { %467 = vmatprep.subr.bf16.mxu0 %v518_v2  ;;  %498 = vmatprep.subr.bf16.mxu1 %v518_v2  ;;  %v268_v12 = vld [vmem:[%s699_s3 + $0x8] sm:$0xff]  ;;  %v521_v13 = vld [vmem:[%s697_s1 + $0x20] sm:$0xff]   ;;  %v274_v17 = vld [vmem:[%s699_s3 + $0x38] sm:$0xff] }
   0x5   :  { %311 = vperm.xlu1 %516, %v269_v9   ;;  %301 = vperm.xlu0 %515, %v267_v10   ;;  %v272_v14 = vld [vmem:[%s699_s3 + $0x28] sm:$0xff]  ;;  %v271_v15 = vld [vmem:[%s699_s3 + $0x20] sm:$0xff]  ;;  %v273_v18 = vld [vmem:[%s699_s3 + $0x30] sm:$0xff] }
   0x6   :  { %481 = vmatprep.mubr.bf16.mxu0 %v42_v7  ;;  %489 = vmatprep.mubr.bf16.mxu1 %v46_v8  ;;  %v522_v16 = vld [vmem:[%s697_s1 + $0x28] sm:$0xff]   ;;  %v523_v19 = vld [vmem:[%s697_s1 + $0x30] sm:$0xff]   ;;  %v275_v21 = vld [vmem:[%s699_s3 + $0x40] sm:$0xff] }
   0x7   :  { %468 = vmatpush3.bf16.msra.mxu0 %v518_v2  ;;  %506 = vmatpush3.bf16.msra.mxu1 %v518_v2  ;;  %v276_v20 = vld [vmem:[%s699_s3 + $0x48] sm:$0xff]  ;;  %v524_v22 = vld [vmem:[%s697_s1 + $0x38] sm:$0xff]   ;;  %v277_v24 = vld [vmem:[%s699_s3 + $0x50] sm:$0xff] }
   0x8   :  { %469 = vmatprep.subr.bf16.mxu0 %v519_v3  ;;  %499 = vmatprep.subr.bf16.mxu1 %v519_v3  ;;  %v278_v23 = vld [vmem:[%s699_s3 + $0x58] sm:$0xff]  ;;  %v39_v25 = vld [vmem:[%s698_s0 + $0x8] sm:$0xff]  ;;  %v279_v32 = vld [vmem:[%s699_s3 + $0x60] sm:$0xff] }
   0x9   :  { %316 = vperm.xlu1 %516, %v270_v11   ;;  %306 = vperm.xlu0 %515, %v268_v12   ;;  %v41_v26 = vld [vmem:[%s698_s0 + $0x18] sm:$0xff]  ;;  %v44_v29 = vunpack.c.l.s8.bf16 %v39_v25  ;;  %v280_v31 = vld [vmem:[%s699_s3 + $0x68] sm:$0xff]  ;;  %v281_v34 = vld [vmem:[%s699_s3 + $0x70] sm:$0xff]  ;;  %v45_v35 = vunpack.c.h.s8.bf16 %v39_v25 }
   0xa   :  { %v48_v30 = vunpack.c.l.s8.bf16 %v41_v26  ;;  %v282_v33 = vld [vmem:[%s699_s3 + $0x78] sm:$0xff]  ;;  %v49_v36 = vunpack.c.h.s8.bf16 %v41_v26  ;;  %v448_v54 = vld [vmem:[%s700_s2] ss:$0 sm:$0xff] }
   0xb   :  { %470 = vmatpush3.bf16.msra.mxu0 %v519_v3  ;;  %507 = vmatpush3.bf16.msra.mxu1 %v519_v3 }
   0xc   :  { %471 = vmatprep.subr.bf16.mxu0 %v520_v4  ;;  %500 = vmatprep.subr.bf16.mxu1 %v520_v4 }
   0xd   :  { %326 = vperm.xlu1 %516, %v272_v14   ;;  %321 = vperm.xlu0 %515, %v271_v15  }
   0xf   :  { %472 = vmatpush3.bf16.msra.mxu0 %v520_v4  ;;  %508 = vmatpush3.bf16.msra.mxu1 %v520_v4 }
  0x10   :  { %473 = vmatprep.subr.bf16.mxu0 %v521_v13  ;;  %501 = vmatprep.subr.bf16.mxu1 %v521_v13 }
  0x11   :  { %336 = vperm.xlu1 %516, %v274_v17   ;;  %331 = vperm.xlu0 %515, %v273_v18  }
  0x13   :  { %474 = vmatpush3.bf16.msra.mxu0 %v521_v13  ;;  %509 = vmatpush3.bf16.msra.mxu1 %v521_v13 }
  0x14   :  { %475 = vmatprep.subr.bf16.mxu0 %v522_v16  ;;  %502 = vmatprep.subr.bf16.mxu1 %v522_v16 }
  0x15   :  { %346 = vperm.xlu1 %516, %v276_v20   ;;  %341 = vperm.xlu0 %515, %v275_v21  }
  0x17   :  { %476 = vmatpush3.bf16.msra.mxu0 %v522_v16  ;;  %510 = vmatpush3.bf16.msra.mxu1 %v522_v16 }
  0x18   :  { %477 = vmatprep.subr.bf16.mxu0 %v523_v19  ;;  %503 = vmatprep.subr.bf16.mxu1 %v523_v19 }
  0x19   :  { %356 = vperm.xlu1 %516, %v278_v23   ;;  %351 = vperm.xlu0 %515, %v277_v24  }
  0x1b   :  { %478 = vmatpush3.bf16.msra.mxu0 %v523_v19  ;;  %511 = vmatpush3.bf16.msra.mxu1 %v523_v19 }
  0x1c   :  { %479 = vmatprep.subr.bf16.mxu0 %v524_v22  ;;  %504 = vmatprep.subr.bf16.mxu1 %v524_v22 }
  0x1d   :  { %366 = vperm.xlu1 %516, %v280_v31   ;;  %361 = vperm.xlu0 %515, %v279_v32  }
  0x1f   :  { %480 = vmatpush3.bf16.msra.mxu0 %v524_v22  ;;  %512 = vmatpush3.bf16.msra.mxu1 %v524_v22 }
  0x21   :  { %376 = vperm.xlu1 %516, %v282_v33   ;;  %371 = vperm.xlu0 %515, %v281_v34  }
  0x22   :  { %482 = vmatmul.mubr.bf16.vlgmr.msra.gmra.mrb[0].mxu0 %v43_v27  ;;  %490 = vmatmul.mubr.bf16.vlgmr.msra.gmra.mrb[0].mxu1 %v47_v28 }
  0x23   :  { %485 = vmatprep.mubr.bf16.mxu0 %v44_v29  ;;  %493 = vmatprep.mubr.bf16.mxu1 %v48_v30 }
  0x2a   :  { %486 = vmatmul.mubr.bf16.gmra.mrb[4].mxu0 %v45_v35  ;;  %494 = vmatmul.mubr.bf16.gmra.mrb[4].mxu1 %v49_v36 }
  0x84   :  { %v302_v37 = vpop.permute.xlu0 %301  ;;  %v312_v38 = vpop.permute.xlu1 %311 }
  0x88   :  { %v307_v39 = vpop.permute.xlu0 %306  ;;  %v317_v40 = vpop.permute.xlu1 %316 }
  0x8c   :  { %v322_v41 = vpop.permute.xlu0 %321  ;;  %v643_v42 = vpop.permute.xlu1 %326 }
  0x90   :  { %v332_v43 = vpop.permute.xlu0 %331  ;;  %v337_v44 = vpop.permute.xlu1 %336 }
  0x94   :  { %v342_v45 = vpop.permute.xlu0 %341  ;;  %v347_v46 = vpop.permute.xlu1 %346 }
  0x98   :  { %v352_v47 = vpop.permute.xlu0 %351  ;;  %v357_v48 = vpop.permute.xlu1 %356 }
  0x9c   :  { %v362_v49 = vpop.permute.xlu0 %361  ;;  %v367_v3 = vpop.permute.xlu1 %366 }
  0xa0   :  { %v372_v8 = vpop.permute.xlu0 %371  ;;  %v377_v23 = vpop.permute.xlu1 %376 }
  0xf5   :  { %v483_v50 = vpop.f32.mrb[0].mxu0  ;;  %v491_v51 = vpop.f32.mrb[0].mxu1 }
  0xf6   :  { %v169_v52 = vpop.f32.mrb[1].mxu0  ;;  %v201_v53 = vpop.f32.mrb[1].mxu1  ;;  %v381_v57 = vmul.f32 %v483_v50, %v312_v38  ;;  %v389_v58 = vmul.f32 %v491_v51, %v352_v47 }
  0xf7   :  { %v484_v55 = vpop.f32.mrb[2].mxu0  ;;  %v492_v56 = vpop.f32.mrb[2].mxu1  ;;  %v379_v61 = vmul.f32 %v302_v37, %v169_v52  ;;  %v387_v62 = vmul.f32 %v342_v45, %v201_v53 }
  0xf8   :  { %v172_v59 = vpop.f32.mrb[3].mxu0  ;;  %v204_v60 = vpop.f32.mrb[3].mxu1  ;;  %v404_v63 = vadd.f32 %v448_v54, %v381_v57  ;;  %v412_v0 = vadd.f32 %v448_v54, %v389_v58  ;;  %v382_v1 = vmul.f32 %v484_v55, %v317_v40  ;;  %v390_v2 = vmul.f32 %v492_v56, %v357_v48 }
  0xf9   :  { %v402_v4 = vadd.f32 %v448_v54, %v379_v61  ;;  %v410_v5 = vadd.f32 %v448_v54, %v387_v62  ;;  %v380_v6 = vmul.f32 %v307_v39, %v172_v59  ;;  %v388_v7 = vmul.f32 %v347_v46, %v204_v60 }
  0xfa   :  { %420 = vst [vmem:[%s701_s4 + $0x10] sm:$0xff] %v404_v63  ;;  %428 = vst [vmem:[%s701_s4 + $0x50] sm:$0xff] %v412_v0  ;;  %v405_v9 = vadd.f32 %v448_v54, %v382_v1  ;;  %v413_v10 = vadd.f32 %v448_v54, %v390_v2 }
  0xfb   :  { %418 = vst [vmem:[%s701_s4] sm:$0xff] %v402_v4  ;;  %426 = vst [vmem:[%s701_s4 + $0x40] sm:$0xff] %v410_v5  ;;  %v403_v11 = vadd.f32 %v448_v54, %v380_v6  ;;  %v411_v12 = vadd.f32 %v448_v54, %v388_v7 }
  0xfc   :  { %421 = vst [vmem:[%s701_s4 + $0x18] sm:$0xff] %v405_v9  ;;  %429 = vst [vmem:[%s701_s4 + $0x58] sm:$0xff] %v413_v10 }
  0xfd   :  { %v487_v13 = vpop.f32.mrb[4].mxu0  ;;  %v495_v14 = vpop.f32.mrb[4].mxu1  ;;  %419 = vst [vmem:[%s701_s4 + $0x8] sm:$0xff] %v403_v11  ;;  %427 = vst [vmem:[%s701_s4 + $0x48] sm:$0xff] %v411_v12 }
  0xfe   :  { %v185_v15 = vpop.f32.mrb[5].mxu0  ;;  %v217_v16 = vpop.f32.mrb[5].mxu1  ;;  %v385_v19 = vmul.f32 %v487_v13, %v332_v43  ;;  %v393_v20 = vmul.f32 %v495_v14, %v372_v8 }
  0xff   :  { %v488_v17 = vpop.f32.mrb[6].mxu0  ;;  %v496_v18 = vpop.f32.mrb[6].mxu1  ;;  %v383_v24 = vmul.f32 %v322_v41, %v185_v15  ;;  %v391_v25 = vmul.f32 %v362_v49, %v217_v16 }
 0x100   :  { %v188_v21 = vpop.f32.mrb[7].mxu0  ;;  %v220_v22 = vpop.f32.mrb[7].mxu1  ;;  %v408_v26 = vadd.f32 %v448_v54, %v385_v19  ;;  %v416_v27 = vadd.f32 %v448_v54, %v393_v20  ;;  %v386_v28 = vmul.f32 %v488_v17, %v337_v44  ;;  %v394_v29 = vmul.f32 %v496_v18, %v377_v23 }
 0x101   :  { %v406_v30 = vadd.f32 %v448_v54, %v383_v24  ;;  %v414_v31 = vadd.f32 %v448_v54, %v391_v25  ;;  %v384_v32 = vmul.f32 %v643_v42, %v188_v21  ;;  %v392_v33 = vmul.f32 %v367_v3, %v220_v22 }
 0x102   :  { %424 = vst [vmem:[%s701_s4 + $0x30] sm:$0xff] %v408_v26  ;;  %432 = vst [vmem:[%s701_s4 + $0x70] sm:$0xff] %v416_v27  ;;  %v409_v34 = vadd.f32 %v448_v54, %v386_v28  ;;  %v417_v35 = vadd.f32 %v448_v54, %v394_v29 }
 0x103   :  { %422 = vst [vmem:[%s701_s4 + $0x20] sm:$0xff] %v406_v30  ;;  %430 = vst [vmem:[%s701_s4 + $0x60] sm:$0xff] %v414_v31  ;;  %v407_v36 = vadd.f32 %v448_v54, %v384_v32  ;;  %v415_v37 = vadd.f32 %v448_v54, %v392_v33 }
 0x104   :  { %425 = vst [vmem:[%s701_s4 + $0x38] sm:$0xff] %v409_v34  ;;  %433 = vst [vmem:[%s701_s4 + $0x78] sm:$0xff] %v417_v35 }
 0x105   :  { %423 = vst [vmem:[%s701_s4 + $0x28] sm:$0xff] %v407_v36  ;;  %431 = vst [vmem:[%s701_s4 + $0x68] sm:$0xff] %v415_v37 }

// kernel: fastgcn_forward.4
= control target key start
LH: loop header
LB: loop body
LE: loop exit
PB: predicated region body
PF: predicated region fallthrough
CT: control target
= control target key end

     0   :  { %v919_v1 = vmov 0   ;;  %s1163_s1 = inlined_call_operand.vmem [shape: bf16[128,128], index: 1, kind: input, shape index: {}]   ;;  %s1164_s0 = inlined_call_operand.vmem [shape: s8[128,128], index: 0, kind: input, shape index: {}]   ;;  %s1165_s4 = inlined_call_operand.vmem [shape: f32[128,1], index: 4, kind: input, shape index: {}]   ;;  %s1166_s2 = inlined_call_operand.vmem [shape: bf16[128,128], index: 2, kind: input, shape index: {}]   ;;  %s1167_s3 = inlined_call_operand.vmem [shape: f32[1,128], index: 3, kind: input, shape index: {}]   ;;  %s1168_s5 = inlined_call_operand.vmem [shape: bf16[128,128], index: 5, kind: output, shape index: {}]  }
   0x1   :  { %v903_v0 = vld [vmem:[%s1163_s1] sm:$0xff]   ;;  %901 = vset.pattern.permute.xlu0 %v919_v1  ;;  %902 = vset.pattern.permute.xlu1 %v919_v1  ;;  %v904_v2 = vld [vmem:[%s1163_s1 + $0x8] sm:$0xff]   ;;  %v905_v3 = vld [vmem:[%s1163_s1 + $0x10] sm:$0xff]  }
   0x2   :  { %836 = vmatprep.subr.bf16.mxu0 %v903_v0  ;;  %v906_v4 = vld [vmem:[%s1163_s1 + $0x18] sm:$0xff]   ;;  %v41_v5 = vld [vmem:[%s1164_s0] sm:$0xff]  ;;  %v272_v8 = vld [vmem:[%s1165_s4 + $0x10] sm:$0xff] }
   0x3   :  { %837 = vmatpush3.bf16.msra.mxu0 %v903_v0  ;;  %v45_v6 = vunpack.c.l.s8.bf16 %v41_v5  ;;  %v270_v7 = vld [vmem:[%s1165_s4] sm:$0xff]  ;;  %314 = vperm.xlu1 %902, %v272_v8   ;;  %v271_v9 = vld [vmem:[%s1165_s4 + $0x8] sm:$0xff]  ;;  %v273_v10 = vld [vmem:[%s1165_s4 + $0x18] sm:$0xff]  ;;  %v46_v28 = vunpack.c.h.s8.bf16 %v41_v5 }
   0x4   :  { %838 = vmatprep.subr.bf16.mxu0 %v904_v2  ;;  %304 = vperm.xlu0 %901, %v270_v7   ;;  %v907_v11 = vld [vmem:[%s1163_s1 + $0x20] sm:$0xff]   ;;  %v275_v13 = vld [vmem:[%s1165_s4 + $0x28] sm:$0xff]  ;;  %v276_v15 = vld [vmem:[%s1165_s4 + $0x30] sm:$0xff] }
   0x5   :  { %852 = vmatprep.mubr.bf16.mxu0 %v45_v6  ;;  %v274_v12 = vld [vmem:[%s1165_s4 + $0x20] sm:$0xff]  ;;  %v908_v14 = vld [vmem:[%s1163_s1 + $0x28] sm:$0xff]   ;;  %v277_v16 = vld [vmem:[%s1165_s4 + $0x38] sm:$0xff] }
   0x6   :  { %v909_v17 = vld [vmem:[%s1163_s1 + $0x30] sm:$0xff]   ;;  %v911_v18 = vld [vmem:[%s1166_s2] sm:$0xff]   ;;  %v279_v20 = vld [vmem:[%s1165_s4 + $0x48] sm:$0xff] }
   0x7   :  { %839 = vmatpush3.bf16.msra.mxu0 %v904_v2  ;;  %319 = vperm.xlu1 %902, %v273_v10   ;;  %v278_v19 = vld [vmem:[%s1165_s4 + $0x40] sm:$0xff]  ;;  %v912_v21 = vld [vmem:[%s1166_s2 + $0x8] sm:$0xff]   ;;  %v910_v22 = vld [vmem:[%s1163_s1 + $0x38] sm:$0xff]  }
   0x8   :  { %840 = vmatprep.subr.bf16.mxu0 %v905_v3  ;;  %309 = vperm.xlu0 %901, %v271_v9   ;;  %v913_v23 = vld [vmem:[%s1166_s2 + $0x10] sm:$0xff]   ;;  %v281_v25 = vld [vmem:[%s1165_s4 + $0x58] sm:$0xff]  ;;  %v42_v26 = vld [vmem:[%s1164_s0 + $0x8] sm:$0xff] }
   0x9   :  { %868 = vmatprep.subr.bf16.mxu1 %v911_v18  ;;  %v280_v24 = vld [vmem:[%s1165_s4 + $0x50] sm:$0xff]  ;;  %v914_v27 = vld [vmem:[%s1166_s2 + $0x18] sm:$0xff]   ;;  %v47_v29 = vunpack.c.l.s8.bf16 %v42_v26  ;;  %v282_v30 = vld [vmem:[%s1165_s4 + $0x60] sm:$0xff]  ;;  %v48_v36 = vunpack.c.h.s8.bf16 %v42_v26 }
   0xa   :  { %869 = vmatpush3.bf16.msra.mxu1 %v911_v18  ;;  %v283_v31 = vld [vmem:[%s1165_s4 + $0x68] sm:$0xff]  ;;  %v915_v32 = vld [vmem:[%s1166_s2 + $0x20] sm:$0xff]   ;;  %v284_v33 = vld [vmem:[%s1165_s4 + $0x70] sm:$0xff] }
   0xb   :  { %841 = vmatpush3.bf16.msra.mxu0 %v905_v3  ;;  %329 = vperm.xlu1 %902, %v275_v13   ;;  %v43_v34 = vld [vmem:[%s1164_s0 + $0x10] sm:$0xff]  ;;  %v285_v35 = vld [vmem:[%s1165_s4 + $0x78] sm:$0xff]  ;;  %v916_v42 = vld [vmem:[%s1166_s2 + $0x28] sm:$0xff]  }
   0xc   :  { %842 = vmatprep.subr.bf16.mxu0 %v906_v4  ;;  %324 = vperm.xlu0 %901, %v274_v12   ;;  %v49_v37 = vunpack.c.l.s8.bf16 %v43_v34  ;;  %v44_v38 = vld [vmem:[%s1164_s0 + $0x18] sm:$0xff]  ;;  %v50_v39 = vunpack.c.h.s8.bf16 %v43_v34  ;;  %v917_v43 = vld [vmem:[%s1166_s2 + $0x30] sm:$0xff]   ;;  %v1075_v53 = vld [vmem:[%s1167_s3] ss:$0 sm:$0xff] }
   0xd   :  { %870 = vmatprep.subr.bf16.mxu1 %v912_v21  ;;  %v51_v40 = vunpack.c.l.s8.bf16 %v44_v38  ;;  %v52_v41 = vunpack.c.h.s8.bf16 %v44_v38  ;;  %v918_v44 = vld [vmem:[%s1166_s2 + $0x38] sm:$0xff]  }
   0xe   :  { %871 = vmatpush3.bf16.msra.mxu1 %v912_v21 }
   0xf   :  { %843 = vmatpush3.bf16.msra.mxu0 %v906_v4  ;;  %339 = vperm.xlu1 %902, %v277_v16  }
  0x10   :  { %844 = vmatprep.subr.bf16.mxu0 %v907_v11  ;;  %334 = vperm.xlu0 %901, %v276_v15  }
  0x11   :  { %872 = vmatprep.subr.bf16.mxu1 %v913_v23 }
  0x12   :  { %873 = vmatpush3.bf16.msra.mxu1 %v913_v23 }
  0x13   :  { %845 = vmatpush3.bf16.msra.mxu0 %v907_v11  ;;  %349 = vperm.xlu1 %902, %v279_v20  }
  0x14   :  { %846 = vmatprep.subr.bf16.mxu0 %v908_v14  ;;  %344 = vperm.xlu0 %901, %v278_v19  }
  0x15   :  { %874 = vmatprep.subr.bf16.mxu1 %v914_v27 }
  0x16   :  { %875 = vmatpush3.bf16.msra.mxu1 %v914_v27 }
  0x17   :  { %847 = vmatpush3.bf16.msra.mxu0 %v908_v14  ;;  %359 = vperm.xlu1 %902, %v281_v25  }
  0x18   :  { %848 = vmatprep.subr.bf16.mxu0 %v909_v17  ;;  %354 = vperm.xlu0 %901, %v280_v24  }
  0x19   :  { %876 = vmatprep.subr.bf16.mxu1 %v915_v32 }
  0x1a   :  { %877 = vmatpush3.bf16.msra.mxu1 %v915_v32 }
  0x1b   :  { %849 = vmatpush3.bf16.msra.mxu0 %v909_v17  ;;  %369 = vperm.xlu1 %902, %v283_v31  }
  0x1c   :  { %850 = vmatprep.subr.bf16.mxu0 %v910_v22  ;;  %364 = vperm.xlu0 %901, %v282_v30  }
  0x1d   :  { %878 = vmatprep.subr.bf16.mxu1 %v916_v42 }
  0x1e   :  { %879 = vmatpush3.bf16.msra.mxu1 %v916_v42 }
  0x1f   :  { %851 = vmatpush3.bf16.msra.mxu0 %v910_v22  ;;  %379 = vperm.xlu1 %902, %v285_v35  }
  0x20   :  { %374 = vperm.xlu0 %901, %v284_v33   ;;  %880 = vmatprep.subr.bf16.mxu1 %v917_v43 }
  0x22   :  { %853 = vmatmul.mubr.bf16.vlgmr.msra.gmra.mrb[0].mxu0 %v46_v28  ;;  %881 = vmatpush3.bf16.msra.mxu1 %v917_v43 }
  0x23   :  { %856 = vmatprep.mubr.bf16.mxu0 %v47_v29  ;;  %882 = vmatprep.subr.bf16.mxu1 %v918_v44 }
  0x26   :  { %883 = vmatpush3.bf16.msra.mxu1 %v918_v44 }
  0x2a   :  { %857 = vmatmul.mubr.bf16.gmra.mrb[4].mxu0 %v48_v36 }
  0x2b   :  { %860 = vmatprep.mubr.bf16.mxu0 %v49_v37 }
  0x32   :  { %861 = vmatmul.mubr.bf16.gmra.mrb[8].mxu0 %v50_v39 }
  0x33   :  { %864 = vmatprep.mubr.bf16.mxu0 %v51_v40 }
  0x3a   :  { %865 = vmatmul.mubr.bf16.gmra.mrb[12].mxu0 %v52_v41 }
  0x82   :  { %v1060_v46 = vpop.permute.xlu1 %314 }
  0x83   :  { %v1058_v45 = vpop.permute.xlu0 %304 }
  0x86   :  { %v1064_v48 = vpop.permute.xlu1 %319 }
  0x87   :  { %v1062_v47 = vpop.permute.xlu0 %309 }
  0x8a   :  { %v1068_v50 = vpop.permute.xlu1 %329 }
  0x8b   :  { %v1066_v49 = vpop.permute.xlu0 %324 }
  0x8e   :  { %v1078_v56 = vpop.permute.xlu1 %339 }
  0x8f   :  { %v1070_v51 = vpop.permute.xlu0 %334 }
  0x92   :  { %v1089_v5 = vpop.permute.xlu1 %349 }
  0x93   :  { %v1086_v1 = vpop.permute.xlu0 %344 }
  0x96   :  { %v1100_v22 = vpop.permute.xlu1 %359 }
  0x97   :  { %v1095_v18 = vpop.permute.xlu0 %354 }
  0x9a   :  { %v1109_v39 = vpop.permute.xlu1 %369 }
  0x9b   :  { %v1104_v32 = vpop.permute.xlu0 %364 }
  0xf5   :  { %v854_v52 = vpop.f32.mrb[0].mxu0 }
  0xf6   :  { %v384_v54 = vmul.f32 %v854_v52, %v1060_v46  ;;  %v172_v55 = vpop.f32.mrb[1].mxu0 }
  0xf7   :  { %v382_v57 = vmul.f32 %v1058_v45, %v172_v55  ;;  %v855_v58 = vpop.f32.mrb[2].mxu0 }
  0xf8   :  { %v407_v59 = vadd.f32 %v1075_v53, %v384_v54  ;;  %v385_v60 = vmul.f32 %v855_v58, %v1064_v48  ;;  %v175_v61 = vpop.f32.mrb[3].mxu0  ;;  %v1115_v54 = vpop.permute.xlu0 %374 }
  0xf9   :  { %v383_v62 = vmul.f32 %v1062_v47, %v175_v61  ;;  %v405_v63 = vadd.f32 %v1075_v53, %v382_v57 }
  0xfa   :  { %v408_v0 = vadd.f32 %v1075_v53, %v385_v60  ;;  %v423_v3 = vmax.f32 %v407_v59, 0.0 }
  0xfb   :  { %v406_v2 = vadd.f32 %v1075_v53, %v383_v62  ;;  %v421_v7 = vmax.f32 %v405_v63, 0.0  ;;  %v380_v62 = vpop.permute.xlu1 %379 }
  0xfc   :  { %v424_v4 = vmax.f32 %v408_v0, 0.0 }
  0xfd   :  { %v858_v6 = vpop.f32.mrb[4].mxu0  ;;  %v422_v8 = vmax.f32 %v406_v2, 0.0 }
  0xfe   :  { %v388_v9 = vmul.f32 %v858_v6, %v1070_v51  ;;  %v188_v10 = vpop.f32.mrb[5].mxu0  ;;  %v438_v11 = vpack.c.bf16 %v424_v4, %v423_v3 }
  0xff   :  { %v386_v12 = vmul.f32 %v1066_v49, %v188_v10  ;;  %v859_v13 = vpop.f32.mrb[6].mxu0  ;;  %v437_v14 = vpack.c.bf16 %v422_v8, %v421_v7 }
 0x100   :  { %v411_v15 = vadd.f32 %v1075_v53, %v388_v9  ;;  %v389_v16 = vmul.f32 %v859_v13, %v1078_v56  ;;  %v191_v17 = vpop.f32.mrb[7].mxu0 }
 0x101   :  { %v409_v19 = vadd.f32 %v1075_v53, %v386_v12  ;;  %v387_v20 = vmul.f32 %v1068_v50, %v191_v17  ;;  %884 = vmatprep.mubr.bf16.mxu1 %v437_v14 }
 0x102   :  { %v412_v21 = vadd.f32 %v1075_v53, %v389_v16  ;;  %885 = vmatmul.mubr.bf16.vlgmr.msra.gmra.mrb[0].mxu1 %v438_v11  ;;  %v427_v24 = vmax.f32 %v411_v15, 0.0 }
 0x103   :  { %v410_v23 = vadd.f32 %v1075_v53, %v387_v20  ;;  %v425_v26 = vmax.f32 %v409_v19, 0.0 }
 0x104   :  { %v428_v25 = vmax.f32 %v412_v21, 0.0 }
 0x105   :  { %v426_v27 = vmax.f32 %v410_v23, 0.0  ;;  %v862_v28 = vpop.f32.mrb[8].mxu0 }
 0x106   :  { %v392_v29 = vmul.f32 %v862_v28, %v1095_v18  ;;  %v204_v30 = vpop.f32.mrb[9].mxu0  ;;  %v440_v31 = vpack.c.bf16 %v428_v25, %v427_v24 }
 0x107   :  { %v390_v33 = vmul.f32 %v1086_v1, %v204_v30  ;;  %v863_v34 = vpop.f32.mrb[10].mxu0  ;;  %v439_v35 = vpack.c.bf16 %v426_v27, %v425_v26 }
 0x108   :  { %v415_v36 = vadd.f32 %v1075_v53, %v392_v29  ;;  %v393_v37 = vmul.f32 %v863_v34, %v1100_v22  ;;  %v207_v38 = vpop.f32.mrb[11].mxu0 }
 0x109   :  { %v413_v40 = vadd.f32 %v1075_v53, %v390_v33  ;;  %v391_v41 = vmul.f32 %v1089_v5, %v207_v38  ;;  %888 = vmatprep.mubr.bf16.mxu1 %v439_v35 }
 0x10a   :  { %v416_v42 = vadd.f32 %v1075_v53, %v393_v37  ;;  %889 = vmatmul.mubr.bf16.gmra.mrb[4].mxu1 %v440_v31  ;;  %v431_v44 = vmax.f32 %v415_v36, 0.0 }
 0x10b   :  { %v414_v43 = vadd.f32 %v1075_v53, %v391_v41  ;;  %v429_v55 = vmax.f32 %v413_v40, 0.0 }
 0x10c   :  { %v432_v52 = vmax.f32 %v416_v42, 0.0 }
 0x10d   :  { %v430_v57 = vmax.f32 %v414_v43, 0.0  ;;  %v866_v58 = vpop.f32.mrb[12].mxu0 }
 0x10e   :  { %v396_v59 = vmul.f32 %v866_v58, %v1115_v54  ;;  %v220_v60 = vpop.f32.mrb[13].mxu0  ;;  %v442_v61 = vpack.c.bf16 %v432_v52, %v431_v44 }
 0x10f   :  { %v394_v63 = vmul.f32 %v1104_v32, %v220_v60  ;;  %v867_v0 = vpop.f32.mrb[14].mxu0  ;;  %v441_v2 = vpack.c.bf16 %v430_v57, %v429_v55 }
 0x110   :  { %v419_v3 = vadd.f32 %v1075_v53, %v396_v59  ;;  %v397_v4 = vmul.f32 %v867_v0, %v380_v62  ;;  %v223_v6 = vpop.f32.mrb[15].mxu0 }
 0x111   :  { %v417_v7 = vadd.f32 %v1075_v53, %v394_v63  ;;  %v395_v8 = vmul.f32 %v1109_v39, %v223_v6  ;;  %892 = vmatprep.mubr.bf16.mxu1 %v441_v2 }
 0x112   :  { %v420_v9 = vadd.f32 %v1075_v53, %v397_v4  ;;  %893 = vmatmul.mubr.bf16.gmra.mrb[8].mxu1 %v442_v61  ;;  %v435_v11 = vmax.f32 %v419_v3, 0.0 }
 0x113   :  { %v418_v10 = vadd.f32 %v1075_v53, %v395_v8  ;;  %v433_v13 = vmax.f32 %v417_v7, 0.0 }
 0x114   :  { %v436_v12 = vmax.f32 %v420_v9, 0.0 }
 0x115   :  { %v434_v14 = vmax.f32 %v418_v10, 0.0 }
 0x116   :  { %v444_v15 = vpack.c.bf16 %v436_v12, %v435_v11 }
 0x117   :  { %v443_v16 = vpack.c.bf16 %v434_v14, %v433_v13 }
 0x119   :  { %896 = vmatprep.mubr.bf16.mxu1 %v443_v16 }
 0x11a   :  { %897 = vmatmul.mubr.bf16.gmra.mrb[12].mxu1 %v444_v15 }
 0x1d5   :  { %v886_v17 = vpop.f32.mrb[0].mxu1 }
 0x1d6   :  { %v543_v19 = vpop.f32.mrb[1].mxu1  ;;  %v608_v21 = vmul.f32 %v886_v17, %v1060_v46 }
 0x1d7   :  { %v887_v20 = vpop.f32.mrb[2].mxu1  ;;  %v606_v25 = vmul.f32 %v543_v19, %v1058_v45 }
 0x1d8   :  { %v609_v23 = vmul.f32 %v887_v20, %v1064_v48  ;;  %v546_v24 = vpop.f32.mrb[3].mxu1 }
 0x1d9   :  { %v607_v53 = vmul.f32 %v546_v24, %v1062_v47 }
 0x1da   :  { %v765_v26 = vpack.c.bf16 %v609_v23, %v608_v21 }
 0x1db   :  { %v760_v27 = vpack.c.bf16 %v607_v53, %v606_v25 }
 0x1dc   :  { %797 = vst [vmem:[%s1168_s5 + $0x8] sm:$0xff] %v765_v26  }
 0x1dd   :  { %761 = vst [vmem:[%s1168_s5] sm:$0xff] %v760_v27   ;;  %v890_v28 = vpop.f32.mrb[4].mxu1 }
 0x1de   :  { %v559_v29 = vpop.f32.mrb[5].mxu1  ;;  %v612_v48 = vmul.f32 %v890_v28, %v1070_v51 }
 0x1df   :  { %v891_v46 = vpop.f32.mrb[6].mxu1  ;;  %v610_v47 = vmul.f32 %v559_v29, %v1066_v49 }
 0x1e0   :  { %v613_v30 = vmul.f32 %v891_v46, %v1078_v56  ;;  %v562_v45 = vpop.f32.mrb[7].mxu1 }
 0x1e1   :  { %v611_v31 = vmul.f32 %v562_v45, %v1068_v50 }
 0x1e2   :  { %v775_v33 = vpack.c.bf16 %v613_v30, %v612_v48 }
 0x1e3   :  { %v770_v34 = vpack.c.bf16 %v611_v31, %v610_v47 }
 0x1e4   :  { %799 = vst [vmem:[%s1168_s5 + $0x18] sm:$0xff] %v775_v33  }
 0x1e5   :  { %798 = vst [vmem:[%s1168_s5 + $0x10] sm:$0xff] %v770_v34   ;;  %v894_v35 = vpop.f32.mrb[8].mxu1 }
 0x1e6   :  { %v575_v36 = vpop.f32.mrb[9].mxu1  ;;  %v616_v56 = vmul.f32 %v894_v35, %v1095_v18 }
 0x1e7   :  { %v895_v51 = vpop.f32.mrb[10].mxu1  ;;  %v614_v50 = vmul.f32 %v575_v36, %v1086_v1 }
 0x1e8   :  { %v617_v37 = vmul.f32 %v895_v51, %v1100_v22  ;;  %v578_v49 = vpop.f32.mrb[11].mxu1 }
 0x1e9   :  { %v615_v38 = vmul.f32 %v578_v49, %v1089_v5 }
 0x1ea   :  { %v785_v40 = vpack.c.bf16 %v617_v37, %v616_v56 }
 0x1eb   :  { %v780_v41 = vpack.c.bf16 %v615_v38, %v614_v50 }
 0x1ec   :  { %801 = vst [vmem:[%s1168_s5 + $0x28] sm:$0xff] %v785_v40  }
 0x1ed   :  { %800 = vst [vmem:[%s1168_s5 + $0x20] sm:$0xff] %v780_v41   ;;  %v898_v42 = vpop.f32.mrb[12].mxu1 }
 0x1ee   :  { %v591_v43 = vpop.f32.mrb[13].mxu1  ;;  %v620_v22 = vmul.f32 %v898_v42, %v1115_v54 }
 0x1ef   :  { %v899_v18 = vpop.f32.mrb[14].mxu1  ;;  %v618_v1 = vmul.f32 %v591_v43, %v1104_v32 }
 0x1f0   :  { %v621_v44 = vmul.f32 %v899_v18, %v380_v62  ;;  %v594_v52 = vpop.f32.mrb[15].mxu1 }
 0x1f1   :  { %v619_v5 = vmul.f32 %v594_v52, %v1109_v39 }
 0x1f2   :  { %v795_v55 = vpack.c.bf16 %v621_v44, %v620_v22 }
 0x1f3   :  { %v790_v57 = vpack.c.bf16 %v619_v5, %v618_v1 }
 0x1f4   :  { %803 = vst [vmem:[%s1168_s5 + $0x38] sm:$0xff] %v795_v55  }
 0x1f5   :  { %802 = vst [vmem:[%s1168_s5 + $0x30] sm:$0xff] %v790_v57  }

</bundles_post_ra>
